<compile_context>
chip_gen: v6e
topology: v6e:2x2x1
jax: 0.10.0
libtpu: 0.0.40
codegen_flags: <defaults>
</compile_context>

<pallas_src>
import functools
import math

import jax
import jax.numpy as jnp
from jax.experimental import pallas as pl
from jax.experimental.pallas import tpu as pltpu


def _round_up(x, m):
    return (x + m - 1) // m * m


def _vmem_limit_bytes():
    """Device-aware scoped-VMEM limit (v7x has 64 MiB physical per core)."""
    try:
        kind = jax.devices()[0].device_kind.lower()
    except Exception:  # pragma: no cover
        kind = ""
    if "v7" in kind:
        return 48 * 1024 * 1024
    return 64 * 1024 * 1024


# ----------------------------------------------------------------------------
# Fused TCN kernel: nb sequences per grid step, all layers inside.
# ----------------------------------------------------------------------------
def _tcn_kernel(x_ref, w1_ref, b1_ref, w2_ref, b2_ref, wd_ref, bd_ref, o_ref,
                xpad_ref, *, ksize, dilations, ds_slot, nb, l_pad, ms_pad):
    c_pad = x_ref.shape[0]
    seg = ms_pad + l_pad                     # per-sequence segment in scratch
    cdt = xpad_ref.dtype                     # matmul compute dtype (bf16)

    # Zero each sequence's causal-history region once per grid step.
    # (Unconditional: VMEM scratch is per-TensorCore, so gating on
    #  program_id == 0 would be unsafe under megacore 'parallel' sharding.)
    if ms_pad > 0:
        zhist = jnp.zeros((c_pad, ms_pad), cdt)
        for n in range(nb):
            xpad_ref[:, pl.ds(n * seg, ms_pad)] = zhist

    def causal_conv(inp_cd, w_stack, b, d):
        # inp_cd: (c_pad, nb*l_pad) in compute dtype.  Write each sequence's
        # slab after its zero history (128-aligned, unmasked stores), read the
        # dilated-shift taps as static lane slices, fold the K taps into ONE
        # bf16 x bf16 -> f32 MXU matmul.
        shifts = [(ksize - 1 - k) * d for k in range(ksize)]
        if any(s > 0 for s in shifts):
            for n in range(nb):
                xpad_ref[:, pl.ds(n * seg + ms_pad, l_pad)] = (
                    inp_cd[:, n * l_pad:(n + 1) * l_pad])
        cols = []
        for s in shifts:
            if s == 0:
                cols.append(inp_cd)                      # reuse in-register value
            else:
                taps = [xpad_ref[:, pl.ds(n * seg + ms_pad - s, l_pad)]
                        for n in range(nb)]
                cols.append(taps[0] if nb == 1 else jnp.concatenate(taps, axis=1))
        x_stack = cols[0] if len(cols) == 1 else jnp.concatenate(cols, axis=0)
        return jnp.dot(w_stack, x_stack, preferred_element_type=jnp.float32) + b

    h = x_ref[...].astype(jnp.float32)                   # (c_pad, nb*l_pad)
    for li, d in enumerate(dilations):
        h_cd = h.astype(cdt)
        h1 = jnp.maximum(causal_conv(h_cd, w1_ref[li], b1_ref[li], d), 0.0)
        # dropout1: identity at inference
        h2 = jnp.maximum(causal_conv(h1.astype(cdt), w2_ref[li], b2_ref[li], d), 0.0)
        # dropout2: identity at inference
        s = ds_slot[li]
        if s >= 0:
            res = jnp.dot(wd_ref[s], h_cd,
                          preferred_element_type=jnp.float32) + bd_ref[s]
        else:
            res = h                                       # exact f32 identity bypass
        h = jnp.maximum(h2 + res, 0.0)

    o_ref[...] = h.astype(o_ref.dtype)                    # lane-dense writeback


# ----------------------------------------------------------------------------
# Parameter init (deterministic, xavier-uniform like the torch module) + packing
# ----------------------------------------------------------------------------
def _xavier_uniform(key, shape, fan_in, fan_out, gain):
    bound = gain * math.sqrt(6.0 / (fan_in + fan_out))
    return jax.random.uniform(key, shape, jnp.float32, -bound, bound)


def init_tcn_params(key, num_inputs, num_channels, kernel_size):
    """Per-layer params in torch layout: conv weight (Cout, Cin, K), bias (Cout,)."""
    gain = math.sqrt(2.0)
    layers = []
    for i, cout in enumerate(num_channels):
        cin = num_inputs if i == 0 else num_channels[i - 1]
        key, k1, k2, k3, k4, k5, k6 = jax.random.split(key, 7)
        w1 = _xavier_uniform(k1, (cout, cin, kernel_size),
                             cin * kernel_size, cout * kernel_size, gain)
        w2 = _xavier_uniform(k2, (cout, cout, kernel_size),
                             cout * kernel_size, cout * kernel_size, gain)
        bb1 = 1.0 / math.sqrt(cin * kernel_size)
        bb2 = 1.0 / math.sqrt(cout * kernel_size)
        b1 = jax.random.uniform(k3, (cout,), jnp.float32, -bb1, bb1)
        b2 = jax.random.uniform(k4, (cout,), jnp.float32, -bb2, bb2)
        if cin != cout:
            wd = _xavier_uniform(k5, (cout, cin, 1), cin, cout, gain)
            bbd = 1.0 / math.sqrt(cin)
            bd = jax.random.uniform(k6, (cout,), jnp.float32, -bbd, bbd)
        else:
            wd, bd = None, None
        layers.append(dict(w1=w1, b1=b1, w2=w2, b2=b2, wd=wd, bd=bd,
                           dilation=2 ** i))
    return layers


def pack_tcn_params(layers, num_inputs, num_channels, kernel_size,
                    compute_dtype=jnp.bfloat16):
    """Pad channels to a sublane-tile width and stack per-layer weights.

    Conv weights become (C_pad, K*C_pad) in `compute_dtype` so the K dilated
    taps fold into one MXU matmul against the stacked shifted inputs.  Biases
    stay f32.  NOTE: for trained torch checkpoints, fold weight_norm
    (w = g * v / ||v||) host-side before calling this.
    """
    K = kernel_size
    sub = 16 if compute_dtype == jnp.bfloat16 else 8
    c_pad = _round_up(max([num_inputs] + list(num_channels)), sub)
    w1s, b1s, w2s, b2s, wds, bds, ds_slot = [], [], [], [], [], [], []

    def pad_conv(w):                      # (Cout, Cin, K) -> (c_pad, K*c_pad)
        wp = jnp.zeros((c_pad, c_pad, K), jnp.float32)
        wp = wp.at[:w.shape[0], :w.shape[1], :].set(w)
        return (jnp.transpose(wp, (0, 2, 1))
                .reshape(c_pad, K * c_pad).astype(compute_dtype))

    def pad_bias(b):                      # (Cout,) -> (c_pad, 1), zero-padded
        return jnp.zeros((c_pad, 1), jnp.float32).at[:b.shape[0], 0].set(b)

    for p in layers:
        w1s.append(pad_conv(p["w1"])); b1s.append(pad_bias(p["b1"]))
        w2s.append(pad_conv(p["w2"])); b2s.append(pad_bias(p["b2"]))
        if p["wd"] is not None:
            ds_slot.append(len(wds))
            wdp = jnp.zeros((c_pad, c_pad), jnp.float32)
            wdp = wdp.at[:p["wd"].shape[0], :p["wd"].shape[1]].set(p["wd"][:, :, 0])
            wds.append(wdp.astype(compute_dtype))
            bds.append(pad_bias(p["bd"]))
        else:
            ds_slot.append(-1)
    if not wds:                            # keep kernel arg shapes well-formed
        wds = [jnp.zeros((c_pad, c_pad), compute_dtype)]
        bds = [jnp.zeros((c_pad, 1), jnp.float32)]

    packed = dict(w1=jnp.stack(w1s), b1=jnp.stack(b1s),
                  w2=jnp.stack(w2s), b2=jnp.stack(b2s),
                  wd=jnp.stack(wds), bd=jnp.stack(bds))
    static = dict(c_pad=c_pad, c_out=num_channels[-1], ksize=K,
                  dilations=tuple(p["dilation"] for p in layers),
                  ds_slot=tuple(ds_slot))
    return packed, static


# ----------------------------------------------------------------------------
# Wrapper
# ----------------------------------------------------------------------------
def temporal_conv_net(x_ncl, packed, static, batch_per_step=None):
    """x_ncl: (B, C_in, L) like PyTorch; returns (B, C_last, L)."""
    B, cin, L = x_ncl.shape
    c_pad = static["c_pad"]
    K = static["ksize"]
    dils = static["dilations"]
    ds_slot = static["ds_slot"]
    cdt = packed["w1"].dtype

    max_shift = (K - 1) * max(dils) if K > 1 else 0
    l_pad = _round_up(L, 128)                         # lane-dense time axis
    ms_pad = _round_up(max_shift, 128) if max_shift > 0 else 0
    seg = ms_pad + l_pad

    # Sequences per grid step (grows matmul N).  For v7x dual TensorCores,
    # prefer B >= 2 * batch_per_step so the 'parallel' grid has >= 2 steps.
    if batch_per_step is None:
        nb = max(d for d in range(1, min(B, 8) + 1) if B % d == 0)
    else:
        nb = batch_per_step
    assert B % nb == 0
    G = B // nb
    n_cols = nb * l_pad

    # Channel + time zero-padding; padded channels/timesteps never leak into
    # real outputs (causal conv, zero padded weight rows/cols and biases).
    x_p = jnp.zeros((B, c_pad, l_pad), x_ncl.dtype).at[:, :cin, :L].set(x_ncl)
    # (G, c_pad, nb*l_pad): channels on sublanes, nb sequences side-by-side on lanes.
    x_g = (x_p.reshape(G, nb, c_pad, l_pad)
              .transpose(0, 2, 1, 3)
              .reshape(G, c_pad, n_cols))

    flops = 0
    for i in range(len(dils)):
        flops += 2 * (2 * c_pad * (K * c_pad) * n_cols)     # two dilated convs
        if ds_slot[i] >= 0:
            flops += 2 * c_pad * c_pad * n_cols              # 1x1 downsample
    flops *= G
    bytes_accessed = int(
        x_g.size * x_g.dtype.itemsize
        + G * c_pad * n_cols * x_g.dtype.itemsize
        + sum(int(v.size) * v.dtype.itemsize for v in packed.values()))

    kernel = functools.partial(_tcn_kernel, ksize=K, dilations=dils,
                               ds_slot=ds_slot, nb=nb, l_pad=l_pad,
                               ms_pad=ms_pad)
    const3 = lambda g: (0, 0, 0)

    out_g = pl.pallas_call(
        kernel,
        out_shape=jax.ShapeDtypeStruct((G, c_pad, n_cols), x_ncl.dtype),
        grid=(G,),
        in_specs=[
            pl.BlockSpec((None, c_pad, n_cols), lambda g: (g, 0, 0)),
            pl.BlockSpec(packed["w1"].shape, const3),
            pl.BlockSpec(packed["b1"].shape, const3),
            pl.BlockSpec(packed["w2"].shape, const3),
            pl.BlockSpec(packed["b2"].shape, const3),
            pl.BlockSpec(packed["wd"].shape, const3),
            pl.BlockSpec(packed["bd"].shape, const3),
        ],
        out_specs=pl.BlockSpec((None, c_pad, n_cols), lambda g: (g, 0, 0)),
        scratch_shapes=[pltpu.VMEM((c_pad, nb * seg), cdt)],
        compiler_params=pltpu.CompilerParams(
            dimension_semantics=("parallel",),
            vmem_limit_bytes=_vmem_limit_bytes()),
        cost_estimate=pl.CostEstimate(flops=int(flops), transcendentals=0,
                                      bytes_accessed=bytes_accessed),
    )(x_g, packed["w1"], packed["b1"], packed["w2"], packed["b2"],
      packed["wd"], packed["bd"])

    out = (out_g.reshape(G, c_pad, nb, l_pad)
                .transpose(0, 2, 1, 3)
                .reshape(B, c_pad, l_pad))
    return out[:, :static["c_out"], :L]


# ----------------------------------------------------------------------------
# Pure-JAX reference (correctness check), unpadded per-layer params, NCL layout.
# Matmul operands are cast to the same compute dtype as the kernel (bf16) with
# f32 accumulation, so the comparison checks kernel mechanics tightly.
# ----------------------------------------------------------------------------
def _ref_causal_conv(x, w, b, d, compute_dtype):
    Bq, _, L = x.shape
    Cout, _, K = w.shape
    out = jnp.broadcast_to(b[None, :, None], (Bq, Cout, L)).astype(jnp.float32)
    xc = x.astype(compute_dtype)
    wc = w.astype(compute_dtype)
    for k in range(K):
        shift = (K - 1 - k) * d
        xk = xc if shift == 0 else jnp.pad(xc, ((0, 0), (0, 0), (shift, 0)))[:, :, :L]
        out = out + jnp.einsum("bcl,oc->bol", xk, wc[:, :, k],
                               preferred_element_type=jnp.float32)
    return out


def temporal_conv_net_ref(x_ncl, layers, compute_dtype=jnp.bfloat16):
    h = x_ncl.astype(jnp.float32)
    for p in layers:
        d = p["dilation"]
        h1 = jax.nn.relu(_ref_causal_conv(h, p["w1"], p["b1"], d, compute_dtype))
        h2 = jax.nn.relu(_ref_causal_conv(h1, p["w2"], p["b2"], d, compute_dtype))
        if p["wd"] is None:
            res = h
        else:
            res = (jnp.einsum("bcl,oc->bol", h.astype(compute_dtype),
                              p["wd"][:, :, 0].astype(compute_dtype),
                              preferred_element_type=jnp.float32)
                   + p["bd"][None, :, None])
        h = jax.nn.relu(h2 + res)
    return h


if __name__ == "__main__":
    B, C_IN, L = 2, 4, 16
    NUM_CHANNELS = [8, 8]
    KSIZE = 2

    key = jax.random.PRNGKey(0)
    kx, kp = jax.random.split(key)
    x = jax.random.normal(kx, (B, C_IN, L), dtype=jnp.float32)   # NCL like torch

    layers = init_tcn_params(kp, C_IN, NUM_CHANNELS, KSIZE)
    packed, static = pack_tcn_params(layers, C_IN, NUM_CHANNELS, KSIZE)

    out = jax.block_until_ready(temporal_conv_net(x, packed, static))
    ref = jax.block_until_ready(temporal_conv_net_ref(x, layers))

    assert out.shape == (B, NUM_CHANNELS[-1], L)
    # Both kernel and reference use bf16 matmul operands with f32 accumulation
    # (residual identity path exact f32); tolerance covers MXU-vs-XLA
    # accumulation-order differences plus rare bf16 rounding-boundary flips.
    max_err = float(jnp.max(jnp.abs(out - ref)))
    assert jnp.allclose(out, ref, atol=2e-2, rtol=2e-2), max_err

    print("KERNEL_OK")
</pallas_src>

<mosaic_0001>
module attributes {stable_mosaic.version = 11 : i64} {
  func.func @_tcn_kernel(%arg0: i32, %arg1: memref<1x16x256xf32, #tpu.memory_space<vmem>>, %arg2: memref<2x16x32xbf16, #tpu.memory_space<vmem>>, %arg3: memref<2x16x1xf32, #tpu.memory_space<vmem>>, %arg4: memref<2x16x32xbf16, #tpu.memory_space<vmem>>, %arg5: memref<2x16x1xf32, #tpu.memory_space<vmem>>, %arg6: memref<1x16x16xbf16, #tpu.memory_space<vmem>>, %arg7: memref<1x16x1xf32, #tpu.memory_space<vmem>>, %arg8: memref<1x16x256xf32, #tpu.memory_space<vmem>>, %arg9: memref<16x512xbf16, #tpu.memory_space<vmem>>) attributes {dimension_semantics = [#tpu.dimension_semantics<parallel>], iteration_bounds = array<i64: 1>, scalar_prefetch = 0 : i64, scratch_operands = 1 : i64, tpu.core_type = #tpu.core_type<tc>, window_params = [{transform_indices = @transform_0, window_bounds = array<i64: 1, 16, 256>}, {pipeline_mode = #tpu.pipeline_mode<synchronous>, transform_indices = @transform_1, window_bounds = array<i64: 2, 16, 32>}, {pipeline_mode = #tpu.pipeline_mode<synchronous>, transform_indices = @transform_2, window_bounds = array<i64: 2, 16, 1>}, {pipeline_mode = #tpu.pipeline_mode<synchronous>, transform_indices = @transform_3, window_bounds = array<i64: 2, 16, 32>}, {pipeline_mode = #tpu.pipeline_mode<synchronous>, transform_indices = @transform_4, window_bounds = array<i64: 2, 16, 1>}, {pipeline_mode = #tpu.pipeline_mode<synchronous>, transform_indices = @transform_5, window_bounds = array<i64: 1, 16, 16>}, {pipeline_mode = #tpu.pipeline_mode<synchronous>, transform_indices = @transform_6, window_bounds = array<i64: 1, 16, 1>}, {transform_indices = @transform_7, window_bounds = array<i64: 1, 16, 256>}]} {
    %cst = arith.constant 0.000000e+00 : bf16
    %0 = vector.broadcast %cst : bf16 to vector<16x128xbf16>
    %c0 = arith.constant 0 : index
    %c0_0 = arith.constant 0 : index
    %1 = vector.load %arg9[%c0, %c0_0] : memref<16x512xbf16, #tpu.memory_space<vmem>>, vector<16x128xbf16>
    tpu.vector_store %arg9[%c0, %c0_0], %0 {strides = array<i32>} : memref<16x512xbf16, #tpu.memory_space<vmem>>, vector<16x128xbf16>,
    %c0_1 = arith.constant 0 : index
    %c256 = arith.constant 256 : index
    %2 = vector.load %arg9[%c0_1, %c256] : memref<16x512xbf16, #tpu.memory_space<vmem>>, vector<16x128xbf16>
    tpu.vector_store %arg9[%c0_1, %c256], %0 {strides = array<i32>} : memref<16x512xbf16, #tpu.memory_space<vmem>>, vector<16x128xbf16>,
    %c0_2 = arith.constant 0 : index
    %c0_3 = arith.constant 0 : index
    %c0_4 = arith.constant 0 : index
    %3 = vector.load %arg1[%c0_2, %c0_3, %c0_4] : memref<1x16x256xf32, #tpu.memory_space<vmem>>, vector<1x16x256xf32>
    %4 = vector.shape_cast %3 : vector<1x16x256xf32> to vector<16x256xf32>
    %5 = arith.truncf %4 : vector<16x256xf32> to vector<16x256xbf16>
    %c0_5 = arith.constant 0 : index
    %c0_6 = arith.constant 0 : index
    %c0_7 = arith.constant 0 : index
    %6 = vector.load %arg2[%c0_5, %c0_6, %c0_7] : memref<2x16x32xbf16, #tpu.memory_space<vmem>>, vector<1x16x32xbf16>
    %7 = vector.shape_cast %6 : vector<1x16x32xbf16> to vector<16x32xbf16>
    %c0_8 = arith.constant 0 : index
    %c0_9 = arith.constant 0 : index
    %c0_10 = arith.constant 0 : index
    %8 = vector.load %arg3[%c0_8, %c0_9, %c0_10] : memref<2x16x1xf32, #tpu.memory_space<vmem>>, vector<1x16x1xf32>
    %9 = vector.shape_cast %8 : vector<1x16x1xf32> to vector<16x1xf32>
    %10 = vector.extract_strided_slice %5 {offsets = [0, 0], sizes = [16, 128], strides = [1, 1]} : vector<16x256xbf16> to vector<16x128xbf16>
    %c0_11 = arith.constant 0 : index
    %c128 = arith.constant 128 : index
    %11 = vector.load %arg9[%c0_11, %c128] : memref<16x512xbf16, #tpu.memory_space<vmem>>, vector<16x128xbf16>
    tpu.vector_store %arg9[%c0_11, %c128], %10 {strides = array<i32>} : memref<16x512xbf16, #tpu.memory_space<vmem>>, vector<16x128xbf16>,
    %12 = vector.extract_strided_slice %5 {offsets = [0, 128], sizes = [16, 128], strides = [1, 1]} : vector<16x256xbf16> to vector<16x128xbf16>
    %c0_12 = arith.constant 0 : index
    %c384 = arith.constant 384 : index
    %13 = vector.load %arg9[%c0_12, %c384] : memref<16x512xbf16, #tpu.memory_space<vmem>>, vector<16x128xbf16>
    tpu.vector_store %arg9[%c0_12, %c384], %12 {strides = array<i32>} : memref<16x512xbf16, #tpu.memory_space<vmem>>, vector<16x128xbf16>,
    %c0_13 = arith.constant 0 : index
    %c127 = arith.constant 127 : index
    %14 = vector.load %arg9[%c0_13, %c127] : memref<16x512xbf16, #tpu.memory_space<vmem>>, vector<16x128xbf16>
    %c0_14 = arith.constant 0 : index
    %c383 = arith.constant 383 : index
    %15 = vector.load %arg9[%c0_14, %c383] : memref<16x512xbf16, #tpu.memory_space<vmem>>, vector<16x128xbf16>
    %16 = tpu.concatenate %14, %15 in 1 : vector<16x128xbf16>, vector<16x128xbf16> -> vector<16x256xbf16>
    %17 = tpu.concatenate %16, %5 in 0 : vector<16x256xbf16>, vector<16x256xbf16> -> vector<32x256xbf16>
    %cst_15 = arith.constant dense<0.000000e+00> : vector<16x256xf32>
    %18 = tpu.matmul %7, %17, %cst_15 {dimension_numbers = #tpu.dot_dimension_numbers<[1], [0], [0], [1], [0, 0, 1, 1], [], []>} : vector<16x32xbf16>, vector<32x256xbf16>, vector<16x256xf32> -> vector<16x256xf32>
    %19 = vector.broadcast %9 : vector<16x1xf32> to vector<16x256xf32>
    %20 = arith.addf %18, %19 : vector<16x256xf32>
    %cst_16 = arith.constant 0.000000e+00 : f32
    %21 = vector.broadcast %cst_16 : f32 to vector<16x256xf32>
    %22 = arith.maximumf %20, %21 : vector<16x256xf32>
    %23 = arith.truncf %22 : vector<16x256xf32> to vector<16x256xbf16>
    %c0_17 = arith.constant 0 : index
    %c0_18 = arith.constant 0 : index
    %c0_19 = arith.constant 0 : index
    %24 = vector.load %arg4[%c0_17, %c0_18, %c0_19] : memref<2x16x32xbf16, #tpu.memory_space<vmem>>, vector<1x16x32xbf16>
    %25 = vector.shape_cast %24 : vector<1x16x32xbf16> to vector<16x32xbf16>
    %c0_20 = arith.constant 0 : index
    %c0_21 = arith.constant 0 : index
    %c0_22 = arith.constant 0 : index
    %26 = vector.load %arg5[%c0_20, %c0_21, %c0_22] : memref<2x16x1xf32, #tpu.memory_space<vmem>>, vector<1x16x1xf32>
    %27 = vector.shape_cast %26 : vector<1x16x1xf32> to vector<16x1xf32>
    %28 = vector.extract_strided_slice %23 {offsets = [0, 0], sizes = [16, 128], strides = [1, 1]} : vector<16x256xbf16> to vector<16x128xbf16>
    %c0_23 = arith.constant 0 : index
    %c128_24 = arith.constant 128 : index
    %29 = vector.load %arg9[%c0_23, %c128_24] : memref<16x512xbf16, #tpu.memory_space<vmem>>, vector<16x128xbf16>
    tpu.vector_store %arg9[%c0_23, %c128_24], %28 {strides = array<i32>} : memref<16x512xbf16, #tpu.memory_space<vmem>>, vector<16x128xbf16>,
    %30 = vector.extract_strided_slice %23 {offsets = [0, 128], sizes = [16, 128], strides = [1, 1]} : vector<16x256xbf16> to vector<16x128xbf16>
    %c0_25 = arith.constant 0 : index
    %c384_26 = arith.constant 384 : index
    %31 = vector.load %arg9[%c0_25, %c384_26] : memref<16x512xbf16, #tpu.memory_space<vmem>>, vector<16x128xbf16>
    tpu.vector_store %arg9[%c0_25, %c384_26], %30 {strides = array<i32>} : memref<16x512xbf16, #tpu.memory_space<vmem>>, vector<16x128xbf16>,
    %c0_27 = arith.constant 0 : index
    %c127_28 = arith.constant 127 : index
    %32 = vector.load %arg9[%c0_27, %c127_28] : memref<16x512xbf16, #tpu.memory_space<vmem>>, vector<16x128xbf16>
    %c0_29 = arith.constant 0 : index
    %c383_30 = arith.constant 383 : index
    %33 = vector.load %arg9[%c0_29, %c383_30] : memref<16x512xbf16, #tpu.memory_space<vmem>>, vector<16x128xbf16>
    %34 = tpu.concatenate %32, %33 in 1 : vector<16x128xbf16>, vector<16x128xbf16> -> vector<16x256xbf16>
    %35 = tpu.concatenate %34, %23 in 0 : vector<16x256xbf16>, vector<16x256xbf16> -> vector<32x256xbf16>
    %cst_31 = arith.constant dense<0.000000e+00> : vector<16x256xf32>
    %36 = tpu.matmul %25, %35, %cst_31 {dimension_numbers = #tpu.dot_dimension_numbers<[1], [0], [0], [1], [0, 0, 1, 1], [], []>} : vector<16x32xbf16>, vector<32x256xbf16>, vector<16x256xf32> -> vector<16x256xf32>
    %37 = vector.broadcast %27 : vector<16x1xf32> to vector<16x256xf32>
    %38 = arith.addf %36, %37 : vector<16x256xf32>
    %cst_32 = arith.constant 0.000000e+00 : f32
    %39 = vector.broadcast %cst_32 : f32 to vector<16x256xf32>
    %40 = arith.maximumf %38, %39 : vector<16x256xf32>
    %c0_33 = arith.constant 0 : index
    %c0_34 = arith.constant 0 : index
    %c0_35 = arith.constant 0 : index
    %41 = vector.load %arg6[%c0_33, %c0_34, %c0_35] : memref<1x16x16xbf16, #tpu.memory_space<vmem>>, vector<1x16x16xbf16>
    %42 = vector.shape_cast %41 : vector<1x16x16xbf16> to vector<16x16xbf16>
    %cst_36 = arith.constant dense<0.000000e+00> : vector<16x256xf32>
    %43 = tpu.matmul %42, %5, %cst_36 {dimension_numbers = #tpu.dot_dimension_numbers<[1], [0], [0], [1], [0, 0, 1, 1], [], []>} : vector<16x16xbf16>, vector<16x256xbf16>, vector<16x256xf32> -> vector<16x256xf32>
    %c0_37 = arith.constant 0 : index
    %c0_38 = arith.constant 0 : index
    %c0_39 = arith.constant 0 : index
    %44 = vector.load %arg7[%c0_37, %c0_38, %c0_39] : memref<1x16x1xf32, #tpu.memory_space<vmem>>, vector<1x16x1xf32>
    %45 = vector.shape_cast %44 : vector<1x16x1xf32> to vector<16x1xf32>
    %46 = vector.broadcast %45 : vector<16x1xf32> to vector<16x256xf32>
    %47 = arith.addf %43, %46 : vector<16x256xf32>
    %48 = arith.addf %40, %47 : vector<16x256xf32>
    %cst_40 = arith.constant 0.000000e+00 : f32
    %49 = vector.broadcast %cst_40 : f32 to vector<16x256xf32>
    %50 = arith.maximumf %48, %49 : vector<16x256xf32>
    %51 = arith.truncf %50 : vector<16x256xf32> to vector<16x256xbf16>
    %c1 = arith.constant 1 : index
    %c0_41 = arith.constant 0 : index
    %c0_42 = arith.constant 0 : index
    %52 = vector.load %arg2[%c1, %c0_41, %c0_42] : memref<2x16x32xbf16, #tpu.memory_space<vmem>>, vector<1x16x32xbf16>
    %53 = vector.shape_cast %52 : vector<1x16x32xbf16> to vector<16x32xbf16>
    %c1_43 = arith.constant 1 : index
    %c0_44 = arith.constant 0 : index
    %c0_45 = arith.constant 0 : index
    %54 = vector.load %arg3[%c1_43, %c0_44, %c0_45] : memref<2x16x1xf32, #tpu.memory_space<vmem>>, vector<1x16x1xf32>
    %55 = vector.shape_cast %54 : vector<1x16x1xf32> to vector<16x1xf32>
    %56 = vector.extract_strided_slice %51 {offsets = [0, 0], sizes = [16, 128], strides = [1, 1]} : vector<16x256xbf16> to vector<16x128xbf16>
    %c0_46 = arith.constant 0 : index
    %c128_47 = arith.constant 128 : index
    %57 = vector.load %arg9[%c0_46, %c128_47] : memref<16x512xbf16, #tpu.memory_space<vmem>>, vector<16x128xbf16>
    tpu.vector_store %arg9[%c0_46, %c128_47], %56 {strides = array<i32>} : memref<16x512xbf16, #tpu.memory_space<vmem>>, vector<16x128xbf16>,
    %58 = vector.extract_strided_slice %51 {offsets = [0, 128], sizes = [16, 128], strides = [1, 1]} : vector<16x256xbf16> to vector<16x128xbf16>
    %c0_48 = arith.constant 0 : index
    %c384_49 = arith.constant 384 : index
    %59 = vector.load %arg9[%c0_48, %c384_49] : memref<16x512xbf16, #tpu.memory_space<vmem>>, vector<16x128xbf16>
    tpu.vector_store %arg9[%c0_48, %c384_49], %58 {strides = array<i32>} : memref<16x512xbf16, #tpu.memory_space<vmem>>, vector<16x128xbf16>,
    %c0_50 = arith.constant 0 : index
    %c126 = arith.constant 126 : index
    %60 = vector.load %arg9[%c0_50, %c126] : memref<16x512xbf16, #tpu.memory_space<vmem>>, vector<16x128xbf16>
    %c0_51 = arith.constant 0 : index
    %c382 = arith.constant 382 : index
    %61 = vector.load %arg9[%c0_51, %c382] : memref<16x512xbf16, #tpu.memory_space<vmem>>, vector<16x128xbf16>
    %62 = tpu.concatenate %60, %61 in 1 : vector<16x128xbf16>, vector<16x128xbf16> -> vector<16x256xbf16>
    %63 = tpu.concatenate %62, %51 in 0 : vector<16x256xbf16>, vector<16x256xbf16> -> vector<32x256xbf16>
    %cst_52 = arith.constant dense<0.000000e+00> : vector<16x256xf32>
    %64 = tpu.matmul %53, %63, %cst_52 {dimension_numbers = #tpu.dot_dimension_numbers<[1], [0], [0], [1], [0, 0, 1, 1], [], []>} : vector<16x32xbf16>, vector<32x256xbf16>, vector<16x256xf32> -> vector<16x256xf32>
    %65 = vector.broadcast %55 : vector<16x1xf32> to vector<16x256xf32>
    %66 = arith.addf %64, %65 : vector<16x256xf32>
    %cst_53 = arith.constant 0.000000e+00 : f32
    %67 = vector.broadcast %cst_53 : f32 to vector<16x256xf32>
    %68 = arith.maximumf %66, %67 : vector<16x256xf32>
    %69 = arith.truncf %68 : vector<16x256xf32> to vector<16x256xbf16>
    %c1_54 = arith.constant 1 : index
    %c0_55 = arith.constant 0 : index
    %c0_56 = arith.constant 0 : index
    %70 = vector.load %arg4[%c1_54, %c0_55, %c0_56] : memref<2x16x32xbf16, #tpu.memory_space<vmem>>, vector<1x16x32xbf16>
    %71 = vector.shape_cast %70 : vector<1x16x32xbf16> to vector<16x32xbf16>
    %c1_57 = arith.constant 1 : index
    %c0_58 = arith.constant 0 : index
    %c0_59 = arith.constant 0 : index
    %72 = vector.load %arg5[%c1_57, %c0_58, %c0_59] : memref<2x16x1xf32, #tpu.memory_space<vmem>>, vector<1x16x1xf32>
    %73 = vector.shape_cast %72 : vector<1x16x1xf32> to vector<16x1xf32>
    %74 = vector.extract_strided_slice %69 {offsets = [0, 0], sizes = [16, 128], strides = [1, 1]} : vector<16x256xbf16> to vector<16x128xbf16>
    %c0_60 = arith.constant 0 : index
    %c128_61 = arith.constant 128 : index
    %75 = vector.load %arg9[%c0_60, %c128_61] : memref<16x512xbf16, #tpu.memory_space<vmem>>, vector<16x128xbf16>
    tpu.vector_store %arg9[%c0_60, %c128_61], %74 {strides = array<i32>} : memref<16x512xbf16, #tpu.memory_space<vmem>>, vector<16x128xbf16>,
    %76 = vector.extract_strided_slice %69 {offsets = [0, 128], sizes = [16, 128], strides = [1, 1]} : vector<16x256xbf16> to vector<16x128xbf16>
    %c0_62 = arith.constant 0 : index
    %c384_63 = arith.constant 384 : index
    %77 = vector.load %arg9[%c0_62, %c384_63] : memref<16x512xbf16, #tpu.memory_space<vmem>>, vector<16x128xbf16>
    tpu.vector_store %arg9[%c0_62, %c384_63], %76 {strides = array<i32>} : memref<16x512xbf16, #tpu.memory_space<vmem>>, vector<16x128xbf16>,
    %c0_64 = arith.constant 0 : index
    %c126_65 = arith.constant 126 : index
    %78 = vector.load %arg9[%c0_64, %c126_65] : memref<16x512xbf16, #tpu.memory_space<vmem>>, vector<16x128xbf16>
    %c0_66 = arith.constant 0 : index
    %c382_67 = arith.constant 382 : index
    %79 = vector.load %arg9[%c0_66, %c382_67] : memref<16x512xbf16, #tpu.memory_space<vmem>>, vector<16x128xbf16>
    %80 = tpu.concatenate %78, %79 in 1 : vector<16x128xbf16>, vector<16x128xbf16> -> vector<16x256xbf16>
    %81 = tpu.concatenate %80, %69 in 0 : vector<16x256xbf16>, vector<16x256xbf16> -> vector<32x256xbf16>
    %cst_68 = arith.constant dense<0.000000e+00> : vector<16x256xf32>
    %82 = tpu.matmul %71, %81, %cst_68 {dimension_numbers = #tpu.dot_dimension_numbers<[1], [0], [0], [1], [0, 0, 1, 1], [], []>} : vector<16x32xbf16>, vector<32x256xbf16>, vector<16x256xf32> -> vector<16x256xf32>
    %83 = vector.broadcast %73 : vector<16x1xf32> to vector<16x256xf32>
    %84 = arith.addf %82, %83 : vector<16x256xf32>
    %cst_69 = arith.constant 0.000000e+00 : f32
    %85 = vector.broadcast %cst_69 : f32 to vector<16x256xf32>
    %86 = arith.maximumf %84, %85 : vector<16x256xf32>
    %87 = arith.addf %86, %50 : vector<16x256xf32>
    %cst_70 = arith.constant 0.000000e+00 : f32
    %88 = vector.broadcast %cst_70 : f32 to vector<16x256xf32>
    %89 = arith.maximumf %87, %88 : vector<16x256xf32>
    %c0_71 = arith.constant 0 : index
    %c0_72 = arith.constant 0 : index
    %c0_73 = arith.constant 0 : index
    %90 = vector.load %arg8[%c0_71, %c0_72, %c0_73] : memref<1x16x256xf32, #tpu.memory_space<vmem>>, vector<1x16x256xf32>
    %91 = vector.shape_cast %90 : vector<1x16x256xf32> to vector<16x256xf32>
    %92 = vector.shape_cast %89 : vector<16x256xf32> to vector<1x16x256xf32>
    tpu.vector_store %arg8[%c0_71, %c0_72, %c0_73], %92 {strides = array<i32>} : memref<1x16x256xf32, #tpu.memory_space<vmem>>, vector<1x16x256xf32>,
    return
  }
  func.func @transform_0(%arg0: i32) -> (i32, i32, i32) {
    %c0_i32 = arith.constant 0 : i32
    %c0_i32_0 = arith.constant 0 : i32
    %c0_i32_1 = arith.constant 0 : i32
    return %arg0, %c0_i32, %c0_i32_0 : i32, i32, i32
  }
  func.func @transform_1(%arg0: i32) -> (i32, i32, i32) {
    %c0_i32 = arith.constant 0 : i32
    %c0_i32_0 = arith.constant 0 : i32
    %c0_i32_1 = arith.constant 0 : i32
    %c0_i32_2 = arith.constant 0 : i32
    return %c0_i32, %c0_i32_0, %c0_i32_1 : i32, i32, i32
  }
  func.func @transform_2(%arg0: i32) -> (i32, i32, i32) {
    %c0_i32 = arith.constant 0 : i32
    %c0_i32_0 = arith.constant 0 : i32
    %c0_i32_1 = arith.constant 0 : i32
    %c0_i32_2 = arith.constant 0 : i32
    return %c0_i32, %c0_i32_0, %c0_i32_1 : i32, i32, i32
  }
  func.func @transform_3(%arg0: i32) -> (i32, i32, i32) {
    %c0_i32 = arith.constant 0 : i32
    %c0_i32_0 = arith.constant 0 : i32
    %c0_i32_1 = arith.constant 0 : i32
    %c0_i32_2 = arith.constant 0 : i32
    return %c0_i32, %c0_i32_0, %c0_i32_1 : i32, i32, i32
  }
  func.func @transform_4(%arg0: i32) -> (i32, i32, i32) {
    %c0_i32 = arith.constant 0 : i32
    %c0_i32_0 = arith.constant 0 : i32
    %c0_i32_1 = arith.constant 0 : i32
    %c0_i32_2 = arith.constant 0 : i32
    return %c0_i32, %c0_i32_0, %c0_i32_1 : i32, i32, i32
  }
  func.func @transform_5(%arg0: i32) -> (i32, i32, i32) {
    %c0_i32 = arith.constant 0 : i32
    %c0_i32_0 = arith.constant 0 : i32
    %c0_i32_1 = arith.constant 0 : i32
    %c0_i32_2 = arith.constant 0 : i32
    return %c0_i32, %c0_i32_0, %c0_i32_1 : i32, i32, i32
  }
  func.func @transform_6(%arg0: i32) -> (i32, i32, i32) {
    %c0_i32 = arith.constant 0 : i32
    %c0_i32_0 = arith.constant 0 : i32
    %c0_i32_1 = arith.constant 0 : i32
    %c0_i32_2 = arith.constant 0 : i32
    return %c0_i32, %c0_i32_0, %c0_i32_1 : i32, i32, i32
  }
  func.func @transform_7(%arg0: i32) -> (i32, i32, i32) {
    %c0_i32 = arith.constant 0 : i32
    %c0_i32_0 = arith.constant 0 : i32
    %c0_i32_1 = arith.constant 0 : i32
    return %arg0, %c0_i32, %c0_i32_0 : i32, i32, i32
  }
}

</mosaic_0001>

<bundles_post_ra>
// kernel: tpu_custom_call.1
= control target key start
LH: loop header
LB: loop body
LE: loop exit
PB: predicated region body
PF: predicated region fallthrough
CT: control target
= control target key end

     0   :  { %v754_v3 = vmov 0   ;;  %s923_s0 = inlined_call_operand.vmem [shape: f32[1,16,256], index: 0, kind: input, shape index: {}]   ;;  %s924_s1 = inlined_call_operand.vmem [shape: bf16[2,16,32], index: 1, kind: input, shape index: {}]   ;;  %s925_s2 = inlined_call_operand.vmem [shape: f32[2,16,1], index: 2, kind: input, shape index: {}]   ;;  %s926_s3 = inlined_call_operand.vmem [shape: bf16[2,16,32], index: 3, kind: input, shape index: {}]   ;;  %s927_s4 = inlined_call_operand.vmem [shape: f32[2,16,1], index: 4, kind: input, shape index: {}]   ;;  %s928_s5 = inlined_call_operand.vmem [shape: bf16[1,16,16], index: 5, kind: input, shape index: {}]   ;;  %s929_s6 = inlined_call_operand.vmem [shape: f32[1,16,1], index: 6, kind: input, shape index: {}]   ;;  %s930_s7 = inlined_call_operand.hbm [shape: f32[1,16,256], index: 7, kind: output, shape index: {}]  }
   0x1   :  { %v33_v0 = vld [vmem:[%s923_s0 + $0x8] sm:$0xff]  ;;  %v35_v1 = vld [vmem:[%s923_s0 + $0x18] sm:$0xff]  ;;  %v32_v2 = vld [vmem:[%s923_s0] sm:$0xff]  ;;  %30 = vst [vmem:[#allocation2 + $0x8] sm:$0xf] %v754_v3  ;;  %144 = vmatprep.mubr.bf16.mxu0 %v754_v3  ;;  %701 = vset.pattern.permute.xlu0 %v754_v3 }
   0x2   :  { %31 = vst [vmem:[#allocation2 + $0x18] sm:$0xf] %v754_v3  ;;  %v681_v4 = vpack.c.bf16 %v33_v0, %v33_v0  ;;  %v682_v5 = vpack.c.bf16 %v35_v1, %v35_v1  ;;  %28 = vst [vmem:[#allocation2] sm:$0xf] %v754_v3  ;;  %v34_v6 = vld [vmem:[%s923_s0 + $0x10] sm:$0xff]  ;;  %v679_v7 = vpack.c.bf16 %v32_v2, %v32_v2  ;;  %702 = vset.pattern.permute.xlu1 %v754_v3 }
   0x3   :  { %29 = vst [vmem:[#allocation2 + $0x10] sm:$0xf] %v754_v3  ;;  %v37_v8 = vpack.c.bf16 %v35_v1, %v33_v0  ;;  %v680_v9 = vpack.c.bf16 %v34_v6, %v34_v6  ;;  %v36_v10 = vpack.c.bf16 %v34_v6, %v32_v2  ;;  %265 = vmatprep.mubr.bf16.mxu1 %v754_v3 }
   0x4   :  { %58 = vst [vmem:[#allocation2 + $0xc] sm:$0xf] %v681_v4  ;;  %59 = vst [vmem:[#allocation2 + $0x1c] sm:$0xf] %v682_v5 }
   0x5   :  { %49 = vst [vmem:[#allocation2 + $0x4] sm:$0xf] %v679_v7  ;;  %124 = vmatprep.subr.bf16.mxu0 %v37_v8  ;;  %50 = vst [vmem:[#allocation2 + $0x14] sm:$0xf] %v680_v9 }
   0x6   :  { %125 = vmatpush1.bf16.msra.mxu0 %v36_v10 }
   0x7   :  { %12 = vsyncpa [#allocation4], 0  ;;  %s755_s0 = smov 1   ;;  %v40_v15 = vld [vmem:[%s925_s2] sm:$0xff]  ;;  %v41_v16 = vld [vmem:[%s925_s2 + $0x8] sm:$0xff]  ;;  %vm76_vm0 = vcmask 7168  }
   0x8   :  { %v709_v23 = vld [vmem:[%s924_s1] sm:$0xff]   ;;  %vm108_vm1 = vcmask 261120   ;;  %vm299_vm2 = vcmask 130048   ;;  %v164_v49 = vld [vmem:[%s927_s4 + $0x8] sm:$0xff]  ;;  %vm396_vm3 = vcmask 15360  }
   0x9   :  { %v703_v11 = vld [vmem:[#allocation2 + $0x8] ss:$16 sps:$4 sm:$0xff]   ;;  %v710_v24 = vld [vmem:[%s928_s5] sm:$0xff]  }
   0xa   :  { %v705_v12 = vld [vmem:[#allocation2] ss:$16 sps:$4 sm:$0xff]   ;;  %87 = vrot.lane.b32.xlu0 %v703_v11, %s755_s0  ;;  %v713_v46 = vld [vmem:[#allocation2 + $0x8] ss:$16 sps:$4 sm:$0xff]  }
   0xb   :  { %v707_v13 = vld [vmem:[#allocation2 + $0xc] ss:$16 sps:$4 sm:$0xff]   ;;  %72 = vrot.lane.b32.xlu1 %v705_v12, %s755_s0  ;;  %v716_v48 = vld [vmem:[#allocation2] ss:$16 sps:$4 sm:$0xff]  }
   0xc   :  { %v708_v14 = vld [vmem:[#allocation2 + $0x4] ss:$16 sps:$4 sm:$0xff]   ;;  %v283_v51 = vld [vmem:[%s929_s6 + $0x8] sm:$0xff] }
   0xd   :  { %v163_v50 = vld [vmem:[%s927_s4] sm:$0xff] }
   0xe   :  { %89 = vrot.lane.b32.xlu0 %v707_v13, %s755_s0  ;;  %v282_v52 = vld [vmem:[%s929_s6] sm:$0xff]  ;;  %s756_s6 = smov 2  }
   0xf   :  { %74 = vrot.lane.b32.xlu1 %v708_v14, %s755_s0  ;;  %v717_v59 = vld [vmem:[%s926_s3] sm:$0xff]  }
  0x12   :  { %95 = vperm.xlu0 %701, %v40_v15  }
  0x13   :  { %100 = vperm.xlu1 %702, %v41_v16  }
  0x17   :  { %209 = vrot.lane.b32.xlu1 %v713_v46, %s755_s0  ;;  %v724_v46 = vld [vmem:[%s924_s1 + $0x8] sm:$0xff]  }
  0x1b   :  { %195 = vrot.lane.b32.xlu1 %v716_v48, %s755_s0 }
  0x1f   :  { %217 = vperm.xlu1 %702, %v163_v50  }
  0x23   :  { %286 = vperm.xlu1 %702, %v282_v52  }
  0x7c   :  { %v88_v17 = vpop.permute.xlu0 %87 }
  0x7d   :  { %v73_v18 = vpop.permute.xlu1 %72 }
  0x80   :  { %v90_v19 = vpop.permute.xlu0 %89 }
  0x81   :  { %v75_v20 = vpop.permute.xlu1 %74  ;;  %v91_v21 = vsel %vm76_vm0, %v88_v17, %v90_v19 }
  0x82   :  { %126 = vmatprep.subr.bf16.mxu0 %v91_v21  ;;  %v77_v22 = vsel %vm76_vm0, %v73_v18, %v75_v20 }
  0x83   :  { %127 = vmatpush1.bf16.msra.mxu0 %v77_v22 }
  0x84   :  { %317 = vmatprep.subr.bf16.mxu0 %v37_v8 }
  0x86   :  { %638 = vmatmul.mubr.msk.bf16.vlgmr.msra.gmra.mxu0 %vm108_vm1, %v709_v23 }
  0x87   :  { %318 = vmatpush1.bf16.msra.mxu0 %v36_v10  ;;  %335 = vmatprep.mubr.bf16.mxu0 %v754_v3 }
  0x8d   :  { %v96_v25 = vpop.permute.xlu0 %95 }
  0x8e   :  { %650 = vmatmul.mubr.msk.bf16.vlgmr.msra.gmra.mxu0 %vm299_vm2, %v710_v24  ;;  %v101_v29 = vpop.permute.xlu1 %100 }
  0x8f   :  { %586 = vmatprep.mubr.bf16.mxu0 %v754_v3 }
  0x92   :  { %v210_v54 = vpop.permute.xlu1 %209 }
  0x96   :  { %v196_v57 = vpop.permute.xlu1 %195 }
  0x9a   :  { %v218_v61 = vpop.permute.xlu1 %217 }
  0x9e   :  { %v287_v0 = vpop.permute.xlu1 %286 }
 0x146   :  { %v146_v26 = vpop.f32.mrf.mxu0 }
 0x147   :  { %v147_v27 = vadd.f32 %v146_v26, %v96_v25 }
 0x148   :  { %v148_v28 = vpop.f32.mrf.mxu0 }
 0x149   :  { %v155_v30 = vmax.f32 %v147_v27, 0.0  ;;  %v149_v31 = vadd.f32 %v148_v28, %v96_v25 }
 0x14a   :  { %v150_v32 = vpop.f32.mrf.mxu0 }
 0x14b   :  { %v683_v33 = vpack.c.bf16 %v155_v30, %v155_v30  ;;  %v156_v34 = vmax.f32 %v149_v31, 0.0  ;;  %v151_v35 = vadd.f32 %v150_v32, %v101_v29 }
 0x14c   :  { %v152_v36 = vpop.f32.mrf.mxu0 }
 0x14d   :  { %172 = vst [vmem:[#allocation2 + $0x4] sm:$0xf] %v683_v33  ;;  %v685_v37 = vpack.c.bf16 %v156_v34, %v156_v34  ;;  %v157_v38 = vmax.f32 %v151_v35, 0.0  ;;  %v153_v39 = vadd.f32 %v152_v36, %v101_v29  ;;  %v720_v35 = vld [vmem:[#allocation2 + $0x8] ss:$16 sps:$4 sm:$0xff]  }
 0x14e   :  { %v337_v60 = vpop.f32.mrf.mxu0  ;;  %407 = vrot.lane.b32.xlu1 %v720_v35, %s756_s6 }
 0x14f   :  { %181 = vst [vmem:[#allocation2 + $0xc] sm:$0xf] %v685_v37  ;;  %v684_v40 = vpack.c.bf16 %v157_v38, %v157_v38  ;;  %v158_v41 = vmax.f32 %v153_v39, 0.0  ;;  %v159_v44 = vpack.c.bf16 %v157_v38, %v155_v30  ;;  %v338_v7 = vadd.f32 %v337_v60, %v287_v0  ;;  %v723_v37 = vld [vmem:[#allocation2] ss:$16 sps:$4 sm:$0xff]   ;;  %v654_v38 = vld [vmem:[%s925_s2 + $0x18] sm:$0xff] }
 0x150   :  { %v339_v62 = vpop.f32.mrf.mxu0  ;;  %v653_v39 = vld [vmem:[%s925_s2 + $0x10] sm:$0xff] }
 0x151   :  { %173 = vst [vmem:[#allocation2 + $0x14] sm:$0xf] %v684_v40  ;;  %v686_v42 = vpack.c.bf16 %v158_v41, %v158_v41  ;;  %v160_v43 = vpack.c.bf16 %v158_v41, %v156_v34  ;;  %v340_v12 = vadd.f32 %v339_v62, %v287_v0 }
 0x152   :  { %v341_v2 = vpop.f32.mrf.mxu0  ;;  %392 = vrot.lane.b32.xlu1 %v723_v37, %s756_s6 }
 0x153   :  { %182 = vst [vmem:[#allocation2 + $0x1c] sm:$0xf] %v686_v42  ;;  %245 = vmatprep.subr.bf16.mxu1 %v160_v43 }
 0x154   :  { %246 = vmatpush1.bf16.msra.mxu1 %v159_v44  ;;  %v343_v11 = vpop.f32.mrf.mxu0 }
 0x156   :  { %415 = vperm.xlu1 %702, %v653_v39  }
 0x158   :  { %v714_v47 = vld [vmem:[#allocation2 + $0x4] ss:$16 sps:$4 sm:$0xff]  }
 0x15a   :  { %v711_v45 = vld [vmem:[#allocation2 + $0xc] ss:$16 sps:$4 sm:$0xff]  }
 0x15b   :  { %211 = vrot.lane.b32.xlu0 %v711_v45, %s755_s0 }
 0x15f   :  { %197 = vrot.lane.b32.xlu0 %v714_v47, %s755_s0 }
 0x163   :  { %222 = vperm.xlu0 %701, %v164_v49  }
 0x167   :  { %291 = vperm.xlu0 %701, %v283_v51  }
 0x1c0   :  { %v408_v41 = vpop.permute.xlu1 %407 }
 0x1c4   :  { %v393_v44 = vpop.permute.xlu1 %392 }
 0x1cd   :  { %v212_v53 = vpop.permute.xlu0 %211 }
 0x1ce   :  { %v213_v55 = vsel %vm76_vm0, %v210_v54, %v212_v53 }
 0x1cf   :  { %247 = vmatprep.subr.bf16.mxu1 %v213_v55 }
 0x1d1   :  { %v198_v56 = vpop.permute.xlu0 %197  ;;  %v416_v47 = vpop.permute.xlu1 %415 }
 0x1d2   :  { %v199_v58 = vsel %vm76_vm0, %v196_v57, %v198_v56 }
 0x1d3   :  { %248 = vmatpush1.bf16.msra.mxu1 %v199_v58 }
 0x1d6   :  { %648 = vmatmul.mubr.msk.bf16.vlgmr.msra.gmra.mxu1 %vm108_vm1, %v717_v59 }
 0x1d7   :  { %463 = vmatprep.mubr.bf16.mxu1 %v754_v3 }
 0x1de   :  { %v223_v63 = vpop.permute.xlu0 %222 }
 0x1e2   :  { %v292_v6 = vpop.permute.xlu0 %291 }
 0x1e3   :  { %v342_v3 = vadd.f32 %v341_v2, %v292_v6  ;;  %v344_v21 = vadd.f32 %v343_v11, %v292_v6 }
 0x296   :  { %v267_v1 = vpop.f32.mrf.mxu1 }
 0x297   :  { %v268_v4 = vadd.f32 %v267_v1, %v218_v61 }
 0x298   :  { %v269_v5 = vpop.f32.mrf.mxu1 }
 0x299   :  { %v276_v8 = vmax.f32 %v268_v4, 0.0  ;;  %v270_v9 = vadd.f32 %v269_v5, %v218_v61  ;;  %v727_v5 = vld [vmem:[#allocation2 + $0x8] ss:$16 sps:$4 sm:$0xff]  }
 0x29a   :  { %v271_v10 = vpop.f32.mrf.mxu1  ;;  %530 = vrot.lane.b32.xlu1 %v727_v5, %s756_s6 }
 0x29b   :  { %v346_v13 = vadd.f32 %v338_v7, %v276_v8  ;;  %v277_v14 = vmax.f32 %v270_v9, 0.0  ;;  %v272_v15 = vadd.f32 %v271_v10, %v223_v63  ;;  %v730_v7 = vld [vmem:[#allocation2] ss:$16 sps:$4 sm:$0xff]   ;;  %v668_v8 = vld [vmem:[%s927_s4 + $0x18] sm:$0xff] }
 0x29c   :  { %v273_v16 = vpop.f32.mrf.mxu1  ;;  %v667_v9 = vld [vmem:[%s927_s4 + $0x10] sm:$0xff] }
 0x29d   :  { %v864_v17 = vmax.f32 %v346_v13, 0.0  ;;  %v347_v18 = vadd.f32 %v340_v12, %v277_v14  ;;  %v278_v19 = vmax.f32 %v272_v15, 0.0  ;;  %v274_v20 = vadd.f32 %v273_v16, %v223_v63 }
 0x29e   :  { %516 = vrot.lane.b32.xlu1 %v730_v7, %s756_s6 }
 0x29f   :  { %v687_v22 = vpack.c.bf16 %v864_v17, %v864_v17  ;;  %v868_v23 = vmax.f32 %v347_v18, 0.0  ;;  %v348_v24 = vadd.f32 %v342_v3, %v278_v19  ;;  %v279_v25 = vmax.f32 %v274_v20, 0.0  ;;  %v731_v3 = vld [vmem:[%s926_s3 + $0x8] sm:$0xff]   ;;  %s757_s3 = smov [#allocation3]  }
 0x2a0   :  { %s618_s4 = sshll.u32 %s757_s3, 4  ;;  %s619_s4 = int_to_ptr.vmem [resolvable:$true] %s618_s4 }
 0x2a1   :  { %369 = vst [vmem:[#allocation2 + $0x4] sm:$0xf] %v687_v22  ;;  %v689_v26 = vpack.c.bf16 %v868_v23, %v868_v23  ;;  %v872_v27 = vmax.f32 %v348_v24, 0.0  ;;  %v349_v28 = vadd.f32 %v344_v21, %v279_v25  ;;  %s732_s12 = scalar_lea.vmem %s619_s4, 512  ;;  %p737_p1 = scmp.lt.s32.totalorder %s619_s4, %s619_s4 }
 0x2a2   :  { %538 = vperm.xlu1 %702, %v667_v9   ;;  %p733_p0 = scmp.ne.s32.totalorder %s619_s4, %s732_s12  ;;  %p738_p2 = scmp.lt.s32.totalorder %s732_s12, %s732_s12 }
 0x2a3   :  { %378 = vst [vmem:[#allocation2 + $0xc] sm:$0xf] %v689_v26  ;;  %v688_v29 = vpack.c.bf16 %v872_v27, %v872_v27  ;;  %v876_v30 = vmax.f32 %v349_v28, 0.0  ;;  %v354_v33 = vpack.c.bf16 %v872_v27, %v864_v17 }
 0x2a4   :  { %p739_p3 = por %p738_p2, %p737_p1 }
 0x2a5   :  { %370 = vst [vmem:[#allocation2 + $0x14] sm:$0xf] %v688_v29  ;;  %v690_v31 = vpack.c.bf16 %v876_v30, %v876_v30  ;;  %v355_v32 = vpack.c.bf16 %v876_v30, %v868_v23 }
 0x2a6   :  { %p740_p4 = pnand %p739_p3, %p733_p0 }
 0x2a7   :  { %379 = vst [vmem:[#allocation2 + $0x1c] sm:$0xf] %v690_v31  ;;  %443 = vmatprep.subr.bf16.mxu1 %v355_v32 }
 0x2a8   :  { %444 = vmatpush1.bf16.msra.mxu1 %v354_v33 }
 0x2ac   :  { %v721_v36 = vld [vmem:[#allocation2 + $0x4] ss:$16 sps:$4 sm:$0xff]  }
 0x2ae   :  { %v718_v34 = vld [vmem:[#allocation2 + $0xc] ss:$16 sps:$4 sm:$0xff]  }
 0x2af   :  { %409 = vrot.lane.b32.xlu0 %v718_v34, %s756_s6 }
 0x2b3   :  { %394 = vrot.lane.b32.xlu0 %v721_v36, %s756_s6 }
 0x2b7   :  { %420 = vperm.xlu0 %701, %v654_v38  }
 0x30c   :  { %v531_v11 = vpop.permute.xlu1 %530 }
 0x310   :  { %v517_v14 = vpop.permute.xlu1 %516 }
 0x31d   :  { %v539_v16 = vpop.permute.xlu1 %538 }
 0x321   :  { %v410_v40 = vpop.permute.xlu0 %409 }
 0x322   :  { %v411_v42 = vsel %vm396_vm3, %v408_v41, %v410_v40 }
 0x323   :  { %445 = vmatprep.subr.bf16.mxu1 %v411_v42 }
 0x325   :  { %v395_v43 = vpop.permute.xlu0 %394 }
 0x326   :  { %v397_v45 = vsel %vm396_vm3, %v393_v44, %v395_v43 }
 0x327   :  { %446 = vmatpush1.bf16.msra.mxu1 %v397_v45 }
 0x32a   :  { %664 = vmatmul.mubr.msk.bf16.vlgmr.msra.gmra.mxu1 %vm108_vm1, %v724_v46 }
 0x332   :  { %v421_v53 = vpop.permute.xlu0 %420 }
 0x3ea   :  { %v465_v48 = vpop.f32.mrf.mxu1 }
 0x3eb   :  { %v466_v49 = vadd.f32 %v465_v48, %v416_v47 }
 0x3ec   :  { %v467_v50 = vpop.f32.mrf.mxu1 }
 0x3ed   :  { %v474_v51 = vmax.f32 %v466_v49, 0.0  ;;  %v468_v52 = vadd.f32 %v467_v50, %v416_v47 }
 0x3ee   :  { %v469_v54 = vpop.f32.mrf.mxu1 }
 0x3ef   :  { %v691_v55 = vpack.c.bf16 %v474_v51, %v474_v51  ;;  %v475_v56 = vmax.f32 %v468_v52, 0.0  ;;  %v470_v57 = vadd.f32 %v469_v54, %v421_v53 }
 0x3f0   :  { %v471_v58 = vpop.f32.mrf.mxu1 }
 0x3f1   :  { %493 = vst [vmem:[#allocation2 + $0x4] sm:$0xf] %v691_v55  ;;  %v693_v59 = vpack.c.bf16 %v475_v56, %v475_v56  ;;  %v476_v60 = vmax.f32 %v470_v57, 0.0  ;;  %v472_v61 = vadd.f32 %v471_v58, %v421_v53 }
 0x3f3   :  { %502 = vst [vmem:[#allocation2 + $0xc] sm:$0xf] %v693_v59  ;;  %v692_v62 = vpack.c.bf16 %v476_v60, %v476_v60  ;;  %v477_v63 = vmax.f32 %v472_v61, 0.0  ;;  %v478_v2 = vpack.c.bf16 %v476_v60, %v474_v51 }
 0x3f5   :  { %494 = vst [vmem:[#allocation2 + $0x14] sm:$0xf] %v692_v62  ;;  %v479_v0 = vpack.c.bf16 %v477_v63, %v475_v56  ;;  %v694_v1 = vpack.c.bf16 %v477_v63, %v477_v63 }
 0x3f7   :  { %503 = vst [vmem:[#allocation2 + $0x1c] sm:$0xf] %v694_v1  ;;  %566 = vmatprep.subr.bf16.mxu0 %v479_v0 }
 0x3f8   :  { %567 = vmatpush1.bf16.msra.mxu0 %v478_v2 }
 0x3fc   :  { %v728_v6 = vld [vmem:[#allocation2 + $0x4] ss:$16 sps:$4 sm:$0xff]  }
 0x3fe   :  { %v725_v4 = vld [vmem:[#allocation2 + $0xc] ss:$16 sps:$4 sm:$0xff]  }
 0x3ff   :  { %532 = vrot.lane.b32.xlu0 %v725_v4, %s756_s6 }
 0x403   :  { %518 = vrot.lane.b32.xlu0 %v728_v6, %s756_s6 }
 0x407   :  { %543 = vperm.xlu0 %701, %v668_v8  }
 0x471   :  { %v533_v10 = vpop.permute.xlu0 %532 }
 0x472   :  { %v534_v12 = vsel %vm396_vm3, %v531_v11, %v533_v10 }
 0x473   :  { %568 = vmatprep.subr.bf16.mxu0 %v534_v12 }
 0x475   :  { %v519_v13 = vpop.permute.xlu0 %518 }
 0x476   :  { %v520_v15 = vsel %vm396_vm3, %v517_v14, %v519_v13 }
 0x477   :  { %569 = vmatpush1.bf16.msra.mxu0 %v520_v15 }
 0x47a   :  { %678 = vmatmul.mubr.msk.bf16.vlgmr.msra.gmra.mxu0 %vm108_vm1, %v731_v3 }
 0x482   :  { %v544_v24 = vpop.permute.xlu0 %543 }
 0x53a   :  { %v588_v18 = vpop.f32.mrf.mxu0 }
 0x53b   :  { %v589_v19 = vadd.f32 %v588_v18, %v539_v16 }
 0x53c   :  { %v590_v20 = vpop.f32.mrf.mxu0 }
 0x53d   :  { %v597_v21 = vmax.f32 %v589_v19, 0.0  ;;  %v591_v22 = vadd.f32 %v590_v20, %v539_v16 }
 0x53e   :  { %v592_v25 = vpop.f32.mrf.mxu0 }
 0x53f   :  { %v601_v26 = vadd.f32 %v597_v21, %v864_v17  ;;  %v598_v28 = vmax.f32 %v591_v22, 0.0  ;;  %v593_v29 = vadd.f32 %v592_v25, %v544_v24 }
 0x540   :  { %v594_v31 = vpop.f32.mrf.mxu0 }
 0x541   :  { %v605_v32 = vmax.f32 %v601_v26, 0.0  ;;  %v602_v33 = vadd.f32 %v598_v28, %v868_v23  ;;  %v599_v34 = vmax.f32 %v593_v29, 0.0  ;;  %v595_v35 = vadd.f32 %v594_v31, %v544_v24 }
 0x543   :  { %609 = vst [vmem:[#allocation3] sm:$0xff] %v605_v32  ;;  %v606_v36 = vmax.f32 %v602_v33, 0.0  ;;  %v603_v37 = vadd.f32 %v599_v34, %v872_v27  ;;  %v600_v38 = vmax.f32 %v595_v35, 0.0 }
 0x545   :  { %610 = vst [vmem:[#allocation3 + $0x8] sm:$0xff] %v606_v36  ;;  %v607_v39 = vmax.f32 %v603_v37, 0.0  ;;  %v604_v40 = vadd.f32 %v600_v38, %v876_v30 }
 0x547   :  { %611 = vst [vmem:[#allocation3 + $0x10] sm:$0xff] %v607_v39  ;;  %v608_v17 = vmax.f32 %v604_v40, 0.0 }
 0x549   :  { %612 = vst [vmem:[#allocation3 + $0x18] sm:$0xff] %v608_v17 }
 0x54a   :  { %743 = shalt.err (!%p740_p4)
}
 0x54b   :  { %s758_s13 = smov 256   ;;  %s759_s14 = smov 16  }
 0x54c   :  { %624 = dma.vmem_to_hbm [thread:$0]  %s619_s4, 512, %s930_s7, [#allocation4], %s758_s13, %s758_s13, %s759_s14  }
 0x54d   :  { %752 = dma.done.wait [#allocation4], 512  }
 0x54e   :  { %753 = vsyncadd [#allocation4], 4294966784 }
 0x54f   :  { %628 = vsyncpa [#allocation4], 1 }

</bundles_post_ra>
